<compile_context>
chip_gen: v7x
topology: tpu7x:2x2x1
jax: 0.10.0
libtpu: 0.0.40
codegen_flags: <defaults>
</compile_context>

<pallas_src>
import functools
import math

import jax
import jax.numpy as jnp
from jax import lax
from jax.experimental import pallas as pl
from jax.experimental.pallas import tpu as pltpu

# ----------------------------- config (opt) ---------------------------------
VOCAB = 50
POS_VOCAB = 20
POST_VOCAB = 20
EMBED_DIM = 20
POS_DIM = 6
POST_DIM = 6
RNN_HIDDEN = 32          # mem_dim must equal rnn_hidden so that
MEM_DIM = 32             # attn d_model (= mem_dim*2) == rnn_hidden*2
NUM_LAYERS = 2           # GCN layers
ATT_HEADS = 4
GAMMA = 0.2              # LeakyReLU negative slope
IN_DIM = RNN_HIDDEN * 2  # bidirectional


# --------------------- fused Pallas kernel (whole batch) ---------------------
def fused_gcn_kernel(x_ref, smask_ref, rmask_ref, wqk_ref, bqk_ref,
                     gw_ref, gb_ref, out_ref,
                     *, B, S, D, n_heads, d_k, layer_dims, mem_dim, gamma):
    x = x_ref[...]                                          # (B, S, D)
    x_flat = x.reshape(B * S, D)                            # leading-dim merge

    # --- fused q/k projection: ONE token-flattened MXU pass ------------------
    # 1/sqrt(d_k) is pre-folded into the q half of wqk/bqk on the host.
    qk = jnp.dot(x_flat, wqk_ref[...],
                 preferred_element_type=jnp.float32) + bqk_ref[...]  # (BS, 2D)
    q_flat = qk[:, :D]
    k_flat = qk[:, D:]

    # --- stacked-head attention: one batched matmul over all (b, h) ----------
    q_stk = jnp.stack([q_flat[b * S:(b + 1) * S, h * d_k:(h + 1) * d_k]
                       for b in range(B) for h in range(n_heads)], axis=0)
    k_stk = jnp.stack([k_flat[b * S:(b + 1) * S, h * d_k:(h + 1) * d_k]
                       for b in range(B) for h in range(n_heads)], axis=0)
    scores = lax.dot_general(q_stk, k_stk, (((2,), (2,)), ((0,), (0,))),
                             preferred_element_type=jnp.float32)  # (BH, S, S)

    # key-padding additive bias, built once per batch, reused for every head
    kp_bias = jnp.where(smask_ref[...] < 0.5, -1e9, 0.0)            # (B, 1, S)
    bias_stk = jnp.stack([kp_bias[b] for b in range(B)
                          for _ in range(n_heads)], axis=0)         # (BH,1,S)
    scores = scores + bias_stk

    # ONE stacked softmax over the key axis (exact reciprocal)
    scores = scores - scores.max(axis=-1, keepdims=True)
    e = jnp.exp(scores)
    p = e * pl.reciprocal(e.sum(axis=-1, keepdims=True), approx=False)

    # mean over heads -> (B, S, S)
    p4 = p.reshape(B, n_heads, S, S)
    adj = p4[:, 0]
    for h in range(1, n_heads):
        adj = adj + p4[:, h]
    adj = adj * (1.0 / n_heads)

    # adj - diag(adj) + I  (reference diagonal ends up exactly 1), then row mask
    row = lax.broadcasted_iota(jnp.int32, (B, S, S), 1)
    col = lax.broadcasted_iota(jnp.int32, (B, S, S), 2)
    adj = jnp.where(row == col, 1.0, adj)
    adj = rmask_ref[...] * adj                              # (B,S,1) * (B,S,S)

    # 1/denom computed once, reused by every GCN layer (flattened over tokens)
    inv_denom_flat = pl.reciprocal(adj.sum(axis=-1, keepdims=True) + 1.0,
                                   approx=False).reshape(B * S, 1)

    # --- GCN layers: adj@h stays batched, weight projection is token-flat ----
    h_cur = x
    off = 0
    for layer, din in enumerate(layer_dims):
        w = gw_ref[off:off + din, :]                        # (din, mem) slab slice
        b = gb_ref[layer:layer + 1, :]                      # (1, mem)
        off += din
        ax = jnp.einsum('bij,bjd->bid', adj, h_cur,
                        preferred_element_type=jnp.float32)  # (B, S, din)
        axw = jnp.dot(ax.reshape(B * S, din), w,
                      preferred_element_type=jnp.float32) + b
        axw = axw * inv_denom_flat
        g = jnp.where(axw > 0, axw, gamma * axw)            # LeakyReLU(gamma)
        h_cur = g.reshape(B, S, mem_dim)
        # gcn_drop is identity in eval

    out_ref[...] = h_cur


def gcn_fused_pallas(x, src_mask, mask_, wqk, bqk, gw, gb,
                     n_heads, layer_dims, mem_dim, gamma):
    B, S, D = x.shape
    assert D % n_heads == 0
    d_k = D // n_heads

    kernel = functools.partial(
        fused_gcn_kernel, B=B, S=S, D=D, n_heads=n_heads, d_k=d_k,
        layer_dims=tuple(layer_dims), mem_dim=mem_dim, gamma=gamma)

    vmem = pltpu.MemorySpace.VMEM
    # Single kernel invocation (no grid): whole batch + all packed parameters
    # live in VMEM for the duration of the call (<1 MiB footprint).
    return pl.pallas_call(
        kernel,
        out_shape=jax.ShapeDtypeStruct((B, S, mem_dim), jnp.float32),
        in_specs=[pl.BlockSpec(memory_space=vmem)] * 7,
        out_specs=pl.BlockSpec(memory_space=vmem),
    )(x, src_mask, mask_, wqk, bqk, gw, gb)


# --------------------------- plain-JAX glue ----------------------------------
def bilstm_fused(x, p):
    """Bidirectional LSTM with both directions fused into ONE lax.scan."""
    B, S, I = x.shape
    H = p['w_hh_f'].shape[1]

    xs = jnp.swapaxes(x, 0, 1)                              # (S, B, I)
    xs2 = jnp.stack([xs, xs[::-1]], axis=1)                 # (S, 2, B, I)

    w_ih = jnp.stack([p['w_ih_f'], p['w_ih_b']], axis=0)    # (2, 4H, I)
    w_hh = jnp.stack([p['w_hh_f'], p['w_hh_b']], axis=0)    # (2, 4H, H)
    bias = jnp.stack([p['b_ih_f'] + p['b_hh_f'],
                      p['b_ih_b'] + p['b_hh_b']], axis=0)   # (2, 4H)

    # input->gates projection batched over all timesteps and both directions
    x_gates = (jnp.einsum('sdbi,dgi->sdbg', xs2, w_ih)
               + bias[None, :, None, :])                    # (S, 2, B, 4H)

    def step(carry, xg_t):
        h, c = carry                                        # (2, B, H) each
        gates = xg_t + jnp.einsum('dbh,dgh->dbg', h, w_hh)
        i, f, g, o = jnp.split(gates, 4, axis=-1)           # PyTorch order ifgo
        i = jax.nn.sigmoid(i)
        f = jax.nn.sigmoid(f)
        g = jnp.tanh(g)
        o = jax.nn.sigmoid(o)
        c = f * c + i * g
        h = o * jnp.tanh(c)
        return (h, c), h

    h0 = jnp.zeros((2, B, H), jnp.float32)
    c0 = jnp.zeros((2, B, H), jnp.float32)
    _, hs = lax.scan(step, (h0, c0), x_gates)               # (S, 2, B, H)

    fwd = hs[:, 0]                                          # (S, B, H)
    bwd = hs[::-1, 1]                                       # re-reverse backward
    out = jnp.concatenate([fwd, bwd], axis=-1)              # (S, B, 2H)
    return jnp.swapaxes(out, 0, 1)                          # (B, S, 2H)


def gcn_forward(params, tok, pos, post, l):
    # embeddings + concat  (in_drop is identity in eval)
    word_embs = params['emb'][tok]                          # (B, S, EMBED_DIM)
    embs = jnp.concatenate(
        [word_embs, params['pos_emb'][pos], params['post_emb'][post]], axis=-1)

    # TODO(synk): pack_padded_sequence variable-length handling is not
    # replicated; example uses full-length sequences (l == S), where the
    # packed bi-LSTM is equivalent to a plain bi-LSTM.
    gcn_inputs = bilstm_fused(embs, params)                 # (B, S, 2H)

    valid = (tok != 0).astype(jnp.float32)
    src_mask = valid[:, None, :]                            # (B, 1, S) key mask
    mask_ = valid[:, :, None]                               # (B, S, 1) row mask

    layer_dims = [IN_DIM] + [MEM_DIM] * (NUM_LAYERS - 1)

    # Single fused kernel: adjacency + denom + all GCN layers, whole batch.
    return gcn_fused_pallas(gcn_inputs, src_mask, mask_,
                            params['wqk'], params['bqk'],
                            params['gw'], params['gb'],
                            ATT_HEADS, layer_dims, MEM_DIM, GAMMA)


# ------------------------- deterministic params ------------------------------
def init_params(key):
    ks = jax.random.split(key, 24)
    s = 0.1

    def n(k, shape):
        return jax.random.normal(k, shape, jnp.float32) * s

    p = {}
    p['emb'] = n(ks[0], (VOCAB, EMBED_DIM))
    p['pos_emb'] = n(ks[1], (POS_VOCAB, POS_DIM))
    p['post_emb'] = n(ks[2], (POST_VOCAB, POST_DIM))

    lstm_in = EMBED_DIM + POS_DIM + POST_DIM
    H = RNN_HIDDEN
    p['w_ih_f'] = n(ks[3], (4 * H, lstm_in))
    p['w_hh_f'] = n(ks[4], (4 * H, H))
    p['b_ih_f'] = n(ks[5], (4 * H,))
    p['b_hh_f'] = n(ks[6], (4 * H,))
    p['w_ih_b'] = n(ks[7], (4 * H, lstm_in))
    p['w_hh_b'] = n(ks[8], (4 * H, H))
    p['b_ih_b'] = n(ks[9], (4 * H,))
    p['b_hh_b'] = n(ks[10], (4 * H,))

    d_model = MEM_DIM * 2                                   # == IN_DIM
    # attention linears stored as (in, out); biases as (1, out)
    p['wq'] = n(ks[11], (d_model, d_model))
    p['bq'] = n(ks[12], (1, d_model))
    p['wk'] = n(ks[13], (d_model, d_model))
    p['bk'] = n(ks[14], (1, d_model))

    # GCN weight_list (self.W exists in __init__ but is unused in forward)
    for layer in range(NUM_LAYERS):
        din = IN_DIM if layer == 0 else MEM_DIM
        p[f'W{layer}'] = n(ks[15 + 2 * layer], (din, MEM_DIM))
        p[f'b{layer}'] = n(ks[16 + 2 * layer], (1, MEM_DIM))
    return p


def pack_params(params):
    """One-time host-side parameter preprocessing.

    * Fold 1/sqrt(d_k) into wq/bq:  (x@wq + bq)@k.T / sqrt(d_k)
      == (x@(wq*s) + bq*s)@k.T  with s = 1/sqrt(d_k).
    * Pack the attention q/k projections into one (D, 2D) slab so the kernel
      issues one DMA and one MXU pass for both.
    * Pack the per-layer GCN weights/biases into (sum_din, mem)/(L, mem) slabs.
    """
    d_model = params['wq'].shape[0]
    d_k = d_model // ATT_HEADS
    scale = 1.0 / math.sqrt(d_k)

    out = dict(params)
    out['wqk'] = jnp.concatenate([params['wq'] * scale, params['wk']], axis=1)
    out['bqk'] = jnp.concatenate([params['bq'] * scale, params['bk']], axis=1)
    out['gw'] = jnp.concatenate([params[f'W{l}'] for l in range(NUM_LAYERS)],
                                axis=0)                     # (IN_DIM+MEM, MEM)
    out['gb'] = jnp.concatenate([params[f'b{l}'] for l in range(NUM_LAYERS)],
                                axis=0)                     # (NUM_LAYERS, MEM)
    return out


# --------------------------------- main --------------------------------------
if __name__ == "__main__":
    B, S = 2, 8
    key = jax.random.PRNGKey(0)
    kp, k1, k2, k3 = jax.random.split(key, 4)

    params = pack_params(init_params(kp))
    tok = jax.random.randint(k1, (B, S), 1, VOCAB)          # non-zero (no padding)
    pos = jax.random.randint(k2, (B, S), 0, POS_VOCAB)
    post = jax.random.randint(k3, (B, S), 0, POST_VOCAB)
    l = jnp.full((B,), S, jnp.int32)                        # full lengths

    out = jax.jit(gcn_forward)(params, tok, pos, post, l)
    out = jax.block_until_ready(out)
    assert out.shape == (B, S, MEM_DIM)
    assert bool(jnp.all(jnp.isfinite(out)))
    print("KERNEL_OK")
</pallas_src>

<mosaic_0001>
module attributes {stable_mosaic.version = 11 : i64} {
  func.func @fused_gcn_kernel(%arg0: memref<2x8x64xf32, #tpu.memory_space<vmem>>, %arg1: memref<2x1x8xf32, #tpu.memory_space<vmem>>, %arg2: memref<2x8x1xf32, #tpu.memory_space<vmem>>, %arg3: memref<64x128xf32, #tpu.memory_space<vmem>>, %arg4: memref<1x128xf32, #tpu.memory_space<vmem>>, %arg5: memref<96x32xf32, #tpu.memory_space<vmem>>, %arg6: memref<2x32xf32, #tpu.memory_space<vmem>>, %arg7: memref<2x8x32xf32, #tpu.memory_space<vmem>>) attributes {dimension_semantics = [], scalar_prefetch = 0 : i64, scratch_operands = 0 : i64, tpu.core_type = #tpu.core_type<tc>} {
    %c0 = arith.constant 0 : index
    %c0_0 = arith.constant 0 : index
    %c0_1 = arith.constant 0 : index
    %0 = vector.load %arg0[%c0, %c0_0, %c0_1] : memref<2x8x64xf32, #tpu.memory_space<vmem>>, vector<2x8x64xf32>
    %1 = vector.shape_cast %0 : vector<2x8x64xf32> to vector<16x64xf32>
    %c0_2 = arith.constant 0 : index
    %c0_3 = arith.constant 0 : index
    %2 = vector.load %arg3[%c0_2, %c0_3] : memref<64x128xf32, #tpu.memory_space<vmem>>, vector<64x128xf32>
    %cst = arith.constant dense<0.000000e+00> : vector<16x128xf32>
    %3 = tpu.matmul %1, %2, %cst {dimension_numbers = #tpu.dot_dimension_numbers<[1], [0], [0], [1], [0, 0, 1, 1], [], []>} : vector<16x64xf32>, vector<64x128xf32>, vector<16x128xf32> -> vector<16x128xf32>
    %c0_4 = arith.constant 0 : index
    %c0_5 = arith.constant 0 : index
    %4 = vector.load %arg4[%c0_4, %c0_5] : memref<1x128xf32, #tpu.memory_space<vmem>>, vector<1x128xf32>
    %5 = vector.broadcast %4 : vector<1x128xf32> to vector<16x128xf32>
    %6 = arith.addf %3, %5 : vector<16x128xf32>
    %7 = vector.extract_strided_slice %6 {offsets = [0, 0], sizes = [16, 64], strides = [1, 1]} : vector<16x128xf32> to vector<16x64xf32>
    %8 = vector.extract_strided_slice %6 {offsets = [0, 64], sizes = [16, 64], strides = [1, 1]} : vector<16x128xf32> to vector<16x64xf32>
    %9 = vector.extract_strided_slice %7 {offsets = [0, 0], sizes = [8, 16], strides = [1, 1]} : vector<16x64xf32> to vector<8x16xf32>
    %10 = vector.extract_strided_slice %7 {offsets = [0, 16], sizes = [8, 16], strides = [1, 1]} : vector<16x64xf32> to vector<8x16xf32>
    %11 = vector.extract_strided_slice %7 {offsets = [0, 32], sizes = [8, 16], strides = [1, 1]} : vector<16x64xf32> to vector<8x16xf32>
    %12 = vector.extract_strided_slice %7 {offsets = [0, 48], sizes = [8, 16], strides = [1, 1]} : vector<16x64xf32> to vector<8x16xf32>
    %13 = vector.extract_strided_slice %7 {offsets = [8, 0], sizes = [8, 16], strides = [1, 1]} : vector<16x64xf32> to vector<8x16xf32>
    %14 = vector.extract_strided_slice %7 {offsets = [8, 16], sizes = [8, 16], strides = [1, 1]} : vector<16x64xf32> to vector<8x16xf32>
    %15 = vector.extract_strided_slice %7 {offsets = [8, 32], sizes = [8, 16], strides = [1, 1]} : vector<16x64xf32> to vector<8x16xf32>
    %16 = vector.extract_strided_slice %7 {offsets = [8, 48], sizes = [8, 16], strides = [1, 1]} : vector<16x64xf32> to vector<8x16xf32>
    %17 = vector.shape_cast %9 : vector<8x16xf32> to vector<1x8x16xf32>
    %18 = vector.shape_cast %10 : vector<8x16xf32> to vector<1x8x16xf32>
    %19 = vector.shape_cast %11 : vector<8x16xf32> to vector<1x8x16xf32>
    %20 = vector.shape_cast %12 : vector<8x16xf32> to vector<1x8x16xf32>
    %21 = vector.shape_cast %13 : vector<8x16xf32> to vector<1x8x16xf32>
    %22 = vector.shape_cast %14 : vector<8x16xf32> to vector<1x8x16xf32>
    %23 = vector.shape_cast %15 : vector<8x16xf32> to vector<1x8x16xf32>
    %24 = vector.shape_cast %16 : vector<8x16xf32> to vector<1x8x16xf32>
    %25 = tpu.concatenate %17, %18, %19, %20, %21, %22, %23, %24 in 0 : vector<1x8x16xf32>, vector<1x8x16xf32>, vector<1x8x16xf32>, vector<1x8x16xf32>, vector<1x8x16xf32>, vector<1x8x16xf32>, vector<1x8x16xf32>, vector<1x8x16xf32> -> vector<8x8x16xf32>
    %26 = vector.extract_strided_slice %8 {offsets = [0, 0], sizes = [8, 16], strides = [1, 1]} : vector<16x64xf32> to vector<8x16xf32>
    %27 = vector.extract_strided_slice %8 {offsets = [0, 16], sizes = [8, 16], strides = [1, 1]} : vector<16x64xf32> to vector<8x16xf32>
    %28 = vector.extract_strided_slice %8 {offsets = [0, 32], sizes = [8, 16], strides = [1, 1]} : vector<16x64xf32> to vector<8x16xf32>
    %29 = vector.extract_strided_slice %8 {offsets = [0, 48], sizes = [8, 16], strides = [1, 1]} : vector<16x64xf32> to vector<8x16xf32>
    %30 = vector.extract_strided_slice %8 {offsets = [8, 0], sizes = [8, 16], strides = [1, 1]} : vector<16x64xf32> to vector<8x16xf32>
    %31 = vector.extract_strided_slice %8 {offsets = [8, 16], sizes = [8, 16], strides = [1, 1]} : vector<16x64xf32> to vector<8x16xf32>
    %32 = vector.extract_strided_slice %8 {offsets = [8, 32], sizes = [8, 16], strides = [1, 1]} : vector<16x64xf32> to vector<8x16xf32>
    %33 = vector.extract_strided_slice %8 {offsets = [8, 48], sizes = [8, 16], strides = [1, 1]} : vector<16x64xf32> to vector<8x16xf32>
    %34 = vector.shape_cast %26 : vector<8x16xf32> to vector<1x8x16xf32>
    %35 = vector.shape_cast %27 : vector<8x16xf32> to vector<1x8x16xf32>
    %36 = vector.shape_cast %28 : vector<8x16xf32> to vector<1x8x16xf32>
    %37 = vector.shape_cast %29 : vector<8x16xf32> to vector<1x8x16xf32>
    %38 = vector.shape_cast %30 : vector<8x16xf32> to vector<1x8x16xf32>
    %39 = vector.shape_cast %31 : vector<8x16xf32> to vector<1x8x16xf32>
    %40 = vector.shape_cast %32 : vector<8x16xf32> to vector<1x8x16xf32>
    %41 = vector.shape_cast %33 : vector<8x16xf32> to vector<1x8x16xf32>
    %42 = tpu.concatenate %34, %35, %36, %37, %38, %39, %40, %41 in 0 : vector<1x8x16xf32>, vector<1x8x16xf32>, vector<1x8x16xf32>, vector<1x8x16xf32>, vector<1x8x16xf32>, vector<1x8x16xf32>, vector<1x8x16xf32>, vector<1x8x16xf32> -> vector<8x8x16xf32>
    %cst_6 = arith.constant dense<0.000000e+00> : vector<8x8x8xf32>
    %43 = tpu.matmul %25, %42, %cst_6 {dimension_numbers = #tpu.dot_dimension_numbers<[2], [2], [1], [1], [0, 0, 0, 1, 1, 1], [0], [0]>} : vector<8x8x16xf32>, vector<8x8x16xf32>, vector<8x8x8xf32> -> vector<8x8x8xf32>
    %c0_7 = arith.constant 0 : index
    %c0_8 = arith.constant 0 : index
    %c0_9 = arith.constant 0 : index
    %44 = vector.load %arg1[%c0_7, %c0_8, %c0_9] : memref<2x1x8xf32, #tpu.memory_space<vmem>>, vector<2x1x8xf32>
    %cst_10 = arith.constant 5.000000e-01 : f32
    %45 = vector.broadcast %cst_10 : f32 to vector<2x1x8xf32>
    %46 = arith.cmpf olt, %44, %45 : vector<2x1x8xf32>
    %cst_11 = arith.constant -1.000000e+09 : f32
    %cst_12 = arith.constant 0.000000e+00 : f32
    %47 = vector.broadcast %cst_11 : f32 to vector<2x1x8xf32>
    %48 = vector.broadcast %cst_12 : f32 to vector<2x1x8xf32>
    %49 = arith.select %46, %47, %48 : vector<2x1x8xi1>, vector<2x1x8xf32>
    %50 = vector.extract_strided_slice %49 {offsets = [0, 0, 0], sizes = [1, 1, 8], strides = [1, 1, 1]} : vector<2x1x8xf32> to vector<1x1x8xf32>
    %51 = vector.shape_cast %50 : vector<1x1x8xf32> to vector<1x8xf32>
    %52 = vector.extract_strided_slice %49 {offsets = [0, 0, 0], sizes = [1, 1, 8], strides = [1, 1, 1]} : vector<2x1x8xf32> to vector<1x1x8xf32>
    %53 = vector.shape_cast %52 : vector<1x1x8xf32> to vector<1x8xf32>
    %54 = vector.extract_strided_slice %49 {offsets = [0, 0, 0], sizes = [1, 1, 8], strides = [1, 1, 1]} : vector<2x1x8xf32> to vector<1x1x8xf32>
    %55 = vector.shape_cast %54 : vector<1x1x8xf32> to vector<1x8xf32>
    %56 = vector.extract_strided_slice %49 {offsets = [0, 0, 0], sizes = [1, 1, 8], strides = [1, 1, 1]} : vector<2x1x8xf32> to vector<1x1x8xf32>
    %57 = vector.shape_cast %56 : vector<1x1x8xf32> to vector<1x8xf32>
    %58 = vector.extract_strided_slice %49 {offsets = [1, 0, 0], sizes = [1, 1, 8], strides = [1, 1, 1]} : vector<2x1x8xf32> to vector<1x1x8xf32>
    %59 = vector.shape_cast %58 : vector<1x1x8xf32> to vector<1x8xf32>
    %60 = vector.extract_strided_slice %49 {offsets = [1, 0, 0], sizes = [1, 1, 8], strides = [1, 1, 1]} : vector<2x1x8xf32> to vector<1x1x8xf32>
    %61 = vector.shape_cast %60 : vector<1x1x8xf32> to vector<1x8xf32>
    %62 = vector.extract_strided_slice %49 {offsets = [1, 0, 0], sizes = [1, 1, 8], strides = [1, 1, 1]} : vector<2x1x8xf32> to vector<1x1x8xf32>
    %63 = vector.shape_cast %62 : vector<1x1x8xf32> to vector<1x8xf32>
    %64 = vector.extract_strided_slice %49 {offsets = [1, 0, 0], sizes = [1, 1, 8], strides = [1, 1, 1]} : vector<2x1x8xf32> to vector<1x1x8xf32>
    %65 = vector.shape_cast %64 : vector<1x1x8xf32> to vector<1x8xf32>
    %66 = vector.shape_cast %51 : vector<1x8xf32> to vector<1x1x8xf32>
    %67 = vector.shape_cast %53 : vector<1x8xf32> to vector<1x1x8xf32>
    %68 = vector.shape_cast %55 : vector<1x8xf32> to vector<1x1x8xf32>
    %69 = vector.shape_cast %57 : vector<1x8xf32> to vector<1x1x8xf32>
    %70 = vector.shape_cast %59 : vector<1x8xf32> to vector<1x1x8xf32>
    %71 = vector.shape_cast %61 : vector<1x8xf32> to vector<1x1x8xf32>
    %72 = vector.shape_cast %63 : vector<1x8xf32> to vector<1x1x8xf32>
    %73 = vector.shape_cast %65 : vector<1x8xf32> to vector<1x1x8xf32>
    %74 = tpu.concatenate %66, %67, %68, %69, %70, %71, %72, %73 in 0 : vector<1x1x8xf32>, vector<1x1x8xf32>, vector<1x1x8xf32>, vector<1x1x8xf32>, vector<1x1x8xf32>, vector<1x1x8xf32>, vector<1x1x8xf32>, vector<1x1x8xf32> -> vector<8x1x8xf32>
    %75 = vector.broadcast %74 : vector<8x1x8xf32> to vector<8x8x8xf32>
    %76 = arith.addf %43, %75 : vector<8x8x8xf32>
    %cst_13 = arith.constant dense<0xFF800000> : vector<8x8xf32>
    %77 = vector.multi_reduction <maximumf>, %76, %cst_13 [2] : vector<8x8x8xf32> to vector<8x8xf32>
    %78 = vector.shape_cast %77 : vector<8x8xf32> to vector<8x8x1xf32>
    %79 = vector.broadcast %78 : vector<8x8x1xf32> to vector<8x8x8xf32>
    %80 = arith.subf %76, %79 : vector<8x8x8xf32>
    %81 = math.exp %80 : vector<8x8x8xf32>
    %cst_14 = arith.constant dense<0.000000e+00> : vector<8x8xf32>
    %82 = vector.multi_reduction <add>, %81, %cst_14 [2] : vector<8x8x8xf32> to vector<8x8xf32>
    %83 = vector.shape_cast %82 : vector<8x8xf32> to vector<8x8x1xf32>
    %84 = tpu.reciprocal %83 : vector<8x8x1xf32> -> vector<8x8x1xf32>
    %85 = vector.broadcast %84 : vector<8x8x1xf32> to vector<8x8x8xf32>
    %86 = arith.mulf %81, %85 : vector<8x8x8xf32>
    %87 = vector.shape_cast %86 : vector<8x8x8xf32> to vector<2x4x8x8xf32>
    %88 = vector.extract_strided_slice %87 {offsets = [0, 0, 0, 0], sizes = [2, 1, 8, 8], strides = [1, 1, 1, 1]} : vector<2x4x8x8xf32> to vector<2x1x8x8xf32>
    %89 = vector.shape_cast %88 : vector<2x1x8x8xf32> to vector<2x8x8xf32>
    %90 = vector.extract_strided_slice %87 {offsets = [0, 1, 0, 0], sizes = [2, 1, 8, 8], strides = [1, 1, 1, 1]} : vector<2x4x8x8xf32> to vector<2x1x8x8xf32>
    %91 = vector.shape_cast %90 : vector<2x1x8x8xf32> to vector<2x8x8xf32>
    %92 = arith.addf %89, %91 : vector<2x8x8xf32>
    %93 = vector.extract_strided_slice %87 {offsets = [0, 2, 0, 0], sizes = [2, 1, 8, 8], strides = [1, 1, 1, 1]} : vector<2x4x8x8xf32> to vector<2x1x8x8xf32>
    %94 = vector.shape_cast %93 : vector<2x1x8x8xf32> to vector<2x8x8xf32>
    %95 = arith.addf %92, %94 : vector<2x8x8xf32>
    %96 = vector.extract_strided_slice %87 {offsets = [0, 3, 0, 0], sizes = [2, 1, 8, 8], strides = [1, 1, 1, 1]} : vector<2x4x8x8xf32> to vector<2x1x8x8xf32>
    %97 = vector.shape_cast %96 : vector<2x1x8x8xf32> to vector<2x8x8xf32>
    %98 = arith.addf %95, %97 : vector<2x8x8xf32>
    %cst_15 = arith.constant 2.500000e-01 : f32
    %99 = vector.broadcast %cst_15 : f32 to vector<2x8x8xf32>
    %100 = arith.mulf %98, %99 : vector<2x8x8xf32>
    %101 = tpu.iota {dimensions = array<i32: 1>} : vector<2x8x8xi32>
    %102 = tpu.iota {dimensions = array<i32: 2>} : vector<2x8x8xi32>
    %103 = arith.cmpi eq, %101, %102 : vector<2x8x8xi32>
    %cst_16 = arith.constant 1.000000e+00 : f32
    %104 = vector.broadcast %cst_16 : f32 to vector<2x8x8xf32>
    %105 = arith.select %103, %104, %100 : vector<2x8x8xi1>, vector<2x8x8xf32>
    %c0_17 = arith.constant 0 : index
    %c0_18 = arith.constant 0 : index
    %c0_19 = arith.constant 0 : index
    %106 = vector.load %arg2[%c0_17, %c0_18, %c0_19] : memref<2x8x1xf32, #tpu.memory_space<vmem>>, vector<2x8x1xf32>
    %107 = vector.broadcast %106 : vector<2x8x1xf32> to vector<2x8x8xf32>
    %108 = arith.mulf %107, %105 : vector<2x8x8xf32>
    %cst_20 = arith.constant dense<0.000000e+00> : vector<2x8xf32>
    %109 = vector.multi_reduction <add>, %108, %cst_20 [2] : vector<2x8x8xf32> to vector<2x8xf32>
    %110 = vector.shape_cast %109 : vector<2x8xf32> to vector<2x8x1xf32>
    %cst_21 = arith.constant 1.000000e+00 : f32
    %111 = vector.broadcast %cst_21 : f32 to vector<2x8x1xf32>
    %112 = arith.addf %110, %111 : vector<2x8x1xf32>
    %113 = tpu.reciprocal %112 : vector<2x8x1xf32> -> vector<2x8x1xf32>
    %114 = vector.shape_cast %113 : vector<2x8x1xf32> to vector<16x1xf32>
    %c0_22 = arith.constant 0 : index
    %c0_23 = arith.constant 0 : index
    %115 = vector.load %arg5[%c0_22, %c0_23] : memref<96x32xf32, #tpu.memory_space<vmem>>, vector<64x32xf32>
    %c0_24 = arith.constant 0 : index
    %c0_25 = arith.constant 0 : index
    %116 = vector.load %arg6[%c0_24, %c0_25] : memref<2x32xf32, #tpu.memory_space<vmem>>, vector<1x32xf32>
    "tpu.trace_start"() <{level = 10 : i32, message = "bij,bjd->bid"}> : () -> ()
    %cst_26 = arith.constant dense<0.000000e+00> : vector<2x8x64xf32>
    %117 = tpu.matmul %108, %0, %cst_26 {dimension_numbers = #tpu.dot_dimension_numbers<[2], [1], [1], [2], [0, 0, 0, 1, 1, 2], [0], [0]>} : vector<2x8x8xf32>, vector<2x8x64xf32>, vector<2x8x64xf32> -> vector<2x8x64xf32>
    "tpu.trace_stop"() : () -> ()
    %118 = vector.shape_cast %117 : vector<2x8x64xf32> to vector<16x64xf32>
    %cst_27 = arith.constant dense<0.000000e+00> : vector<16x32xf32>
    %119 = tpu.matmul %118, %115, %cst_27 {dimension_numbers = #tpu.dot_dimension_numbers<[1], [0], [0], [1], [0, 0, 1, 1], [], []>} : vector<16x64xf32>, vector<64x32xf32>, vector<16x32xf32> -> vector<16x32xf32>
    %120 = vector.broadcast %116 : vector<1x32xf32> to vector<16x32xf32>
    %121 = arith.addf %119, %120 : vector<16x32xf32>
    %122 = vector.broadcast %114 : vector<16x1xf32> to vector<16x32xf32>
    %123 = arith.mulf %121, %122 : vector<16x32xf32>
    %cst_28 = arith.constant 0.000000e+00 : f32
    %124 = vector.broadcast %cst_28 : f32 to vector<16x32xf32>
    %125 = arith.cmpf ogt, %123, %124 : vector<16x32xf32>
    %cst_29 = arith.constant 2.000000e-01 : f32
    %126 = vector.broadcast %cst_29 : f32 to vector<16x32xf32>
    %127 = arith.mulf %126, %123 : vector<16x32xf32>
    %128 = arith.select %125, %123, %127 : vector<16x32xi1>, vector<16x32xf32>
    %129 = vector.shape_cast %128 : vector<16x32xf32> to vector<2x8x32xf32>
    %c64 = arith.constant 64 : index
    %c0_30 = arith.constant 0 : index
    %130 = vector.load %arg5[%c64, %c0_30] : memref<96x32xf32, #tpu.memory_space<vmem>>, vector<32x32xf32>
    %c1 = arith.constant 1 : index
    %c0_31 = arith.constant 0 : index
    %131 = vector.load %arg6[%c1, %c0_31] : memref<2x32xf32, #tpu.memory_space<vmem>>, vector<1x32xf32>
    "tpu.trace_start"() <{level = 10 : i32, message = "bij,bjd->bid"}> : () -> ()
    %cst_32 = arith.constant dense<0.000000e+00> : vector<2x8x32xf32>
    %132 = tpu.matmul %108, %129, %cst_32 {dimension_numbers = #tpu.dot_dimension_numbers<[2], [1], [1], [2], [0, 0, 0, 1, 1, 2], [0], [0]>} : vector<2x8x8xf32>, vector<2x8x32xf32>, vector<2x8x32xf32> -> vector<2x8x32xf32>
    "tpu.trace_stop"() : () -> ()
    %133 = vector.shape_cast %132 : vector<2x8x32xf32> to vector<16x32xf32>
    %cst_33 = arith.constant dense<0.000000e+00> : vector<16x32xf32>
    %134 = tpu.matmul %133, %130, %cst_33 {dimension_numbers = #tpu.dot_dimension_numbers<[1], [0], [0], [1], [0, 0, 1, 1], [], []>} : vector<16x32xf32>, vector<32x32xf32>, vector<16x32xf32> -> vector<16x32xf32>
    %135 = vector.broadcast %131 : vector<1x32xf32> to vector<16x32xf32>
    %136 = arith.addf %134, %135 : vector<16x32xf32>
    %137 = vector.broadcast %114 : vector<16x1xf32> to vector<16x32xf32>
    %138 = arith.mulf %136, %137 : vector<16x32xf32>
    %cst_34 = arith.constant 0.000000e+00 : f32
    %139 = vector.broadcast %cst_34 : f32 to vector<16x32xf32>
    %140 = arith.cmpf ogt, %138, %139 : vector<16x32xf32>
    %cst_35 = arith.constant 2.000000e-01 : f32
    %141 = vector.broadcast %cst_35 : f32 to vector<16x32xf32>
    %142 = arith.mulf %141, %138 : vector<16x32xf32>
    %143 = arith.select %140, %138, %142 : vector<16x32xi1>, vector<16x32xf32>
    %144 = vector.shape_cast %143 : vector<16x32xf32> to vector<2x8x32xf32>
    %c0_36 = arith.constant 0 : index
    %c0_37 = arith.constant 0 : index
    %c0_38 = arith.constant 0 : index
    %145 = vector.load %arg7[%c0_36, %c0_37, %c0_38] : memref<2x8x32xf32, #tpu.memory_space<vmem>>, vector<2x8x32xf32>
    tpu.vector_store %arg7[%c0_36, %c0_37, %c0_38], %144 {strides = array<i32>} : memref<2x8x32xf32, #tpu.memory_space<vmem>>, vector<2x8x32xf32>,
    return
  }
}

</mosaic_0001>

<bundles_post_ra>
// kernel: custom-call.8
= control target key start
LH: loop header
LB: loop body
LE: loop exit
PB: predicated region body
PF: predicated region fallthrough
CT: control target
= control target key end

     0   :  { %s6_s0 = inlined_call_operand.vmem [shape: f32[8,2,2,32], index: 0, kind: output, shape index: {}]  }

// kernel: custom-call
= control target key start
LH: loop header
LB: loop body
LE: loop exit
PB: predicated region body
PF: predicated region fallthrough
CT: control target
= control target key end

     0   :  { %s6_s0 = inlined_call_operand.vmem [shape: f32[2,2,32], index: 0, kind: output, shape index: {}]  }

// kernel: gcn_forward.1
= control target key start
LH: loop header
LB: loop body
LE: loop exit
PB: predicated region body
PF: predicated region fallthrough
CT: control target
= control target key end

     0   :  { %vm44_vm0 = vcmask 523264   ;;  %s1951_s0 = inlined_call_operand.vmem [shape: f32[2,8,64], index: 0, kind: input, shape index: {}]   ;;  %s1952_s1 = inlined_call_operand.vmem [shape: f32[2,1,8], index: 1, kind: input, shape index: {}]   ;;  %s1953_s2 = inlined_call_operand.vmem [shape: f32[2,8,1], index: 2, kind: input, shape index: {}]   ;;  %s1954_s3 = inlined_call_operand.vmem [shape: f32[64,128], index: 3, kind: input, shape index: {}]   ;;  %s1955_s4 = inlined_call_operand.vmem [shape: f32[1,128], index: 4, kind: input, shape index: {}]   ;;  %s1956_s5 = inlined_call_operand.vmem [shape: f32[96,32], index: 5, kind: input, shape index: {}]   ;;  %s1957_s6 = inlined_call_operand.vmem [shape: f32[2,32], index: 6, kind: input, shape index: {}]   ;;  %s1958_s7 = inlined_call_operand.hbm [shape: f32[2,8,32], index: 7, kind: output, shape index: {}]  }
   0x1   :  { %v29_v0 = vld [vmem:[%s1954_s3] sm:$0xff]  ;;  %v30_v1 = vld [vmem:[%s1954_s3 + $0x8] sm:$0xff]  ;;  %v31_v2 = vld [vmem:[%s1954_s3 + $0x10] sm:$0xff] }
   0x2   :  { %v1588_v3 = vpack.c.bf16 %v30_v1, %v29_v0  ;;  %v32_v4 = vld [vmem:[%s1954_s3 + $0x18] sm:$0xff]  ;;  %v33_v6 = vld [vmem:[%s1954_s3 + $0x20] sm:$0xff]  ;;  %v34_v7 = vld [vmem:[%s1954_s3 + $0x28] sm:$0xff] }
   0x3   :  { %v1592_v5 = vpack.c.bf16 %v32_v4, %v31_v2  ;;  %v1771_v8 = vld [vmem:[%s1951_s0] sm:$0xff] }
   0x4   :  { %1589 = vmatprep.subr.bf16.mxu0 %v1588_v3  ;;  %1495 = vmatprep.mubr.msk.f32.mxu0 %vm44_vm0, %v1771_v8 }
   0x5   :  { %12 = vsyncpa [#allocation3], 0  ;;  %1591 = vmatpush3.bf16.msra.mxu0 %v1588_v3  ;;  %v1596_v9 = vpack.c.bf16 %v34_v7, %v33_v6  ;;  %v35_v10 = vld [vmem:[%s1954_s3 + $0x30] sm:$0xff]  ;;  %v36_v11 = vld [vmem:[%s1954_s3 + $0x38] sm:$0xff]  ;;  %v1700_v16 = vmov 0.0   ;;  %s1701_s3 = smov 80   ;;  %v148_v36 = vlaneseq }
   0x6   :  { %1593 = vmatprep.subr.bf16.mxu0 %v1592_v5  ;;  %v1600_v12 = vpack.c.bf16 %v36_v11, %v35_v10  ;;  %v1784_v13 = vld [vmem:[%s1951_s0 + $0x8] sm:$0xff]  ;;  %v1400_v14 = vld [vmem:[%s1955_s4] ss:$0 sm:$0xff]  ;;  %1498 = vmatprep.subr.mxu1 %v1700_v16  ;;  %s1702_s23 = smov 112   ;;  %vm1703_vm1 = vmmov 0   ;;  %s1704_s0 = smov 96  }
   0x7   :  { %1500 = vmatprep.mubr.msk.f32.mxu1 %vm1703_vm1, %v1700_v16  ;;  %s1705_s4 = smov 64   ;;  %vm160_vm2 = vcmask 130048   ;;  %v140_v37 = vld [vmem:[%s1952_s1] sm:$0x1]  ;;  %v1844_v38 = vshrl.u32 %v148_v36, 7  ;;  %vm767_vm5 = vcmask 64512  }
   0x8   :  { %vm142_vm3 = vcmp.lt.f32.partialorder %v140_v37, 0.5  ;;  %v141_v41 = vld [vmem:[%s1952_s1 + $0x1] sm:$0x1]  ;;  %v1706_v11 = vmov 0   ;;  %vm1292_vm9 = vcmask 261120  }
   0x9   :  { %1595 = vmatpush3.bf16.msra.mxu0 %v1592_v5  ;;  %v150_v39 = vsub.s32 0, %v1844_v38  ;;  %v144_v40 = vsel %vm142_vm3, -1e+09, %v1700_v16  ;;  %vm143_vm4 = vcmp.lt.f32.partialorder %v141_v41, 0.5  ;;  %1638 = vset.pattern.permute.xlu1 %v1706_v11 }
   0xa   :  { %1597 = vmatprep.subr.bf16.mxu0 %v1596_v9  ;;  %v145_v46 = vsel %vm143_vm4, -1e+09, %v1700_v16  ;;  %1639 = vset.pattern.permute.xlu0 %v1706_v11 }
   0xb   :  { %v151_v42 = vrot.slane %v144_v40, %v150_v39  ;;  %v155_v51 = vrot.slane %v145_v46, %v150_v39 }
   0xd   :  { %1599 = vmatpush3.bf16.msra.mxu0 %v1596_v9 }
   0xe   :  { %1601 = vmatprep.subr.bf16.mxu0 %v1600_v12 }
  0x11   :  { %1603 = vmatpush3.bf16.msra.mxu0 %v1600_v12 }
  0x12   :  { %1518 = vmatprep.subr.mxu0 %v1700_v16 }
  0x14   :  { %1496 = vmatmul.mubr.msk.f32.vlgmr.msra.gmra.mrb[0].mxu0 %vm44_vm0, %v1784_v13 }
  0x15   :  { %1520 = vmatprep.mubr.msk.f32.mxu0 %vm1703_vm1, %v1700_v16 }
  0xe7   :  { %v1497_v15 = vpop.f32.mrb[0].mxu0 }
  0xe8   :  { %v117_v17 = vpop.f32.mrb[1].mxu0  ;;  %v123_v19 = vadd.f32 %v1497_v15, %v1400_v14 }
  0xe9   :  { %v118_v18 = vadd.f32 %v1400_v14, %v117_v17 }
  0xeb   :  { %131 = vrot.lane.b32.xlu1 %v118_v18, %s1701_s3  ;;  %127 = vrot.lane.b32.xlu0 %v118_v18, %s1702_s23 }
  0xef   :  { %134 = vrot.lane.b32.xlu1 %v123_v19, %s1702_s23  ;;  %129 = vrot.lane.b32.xlu0 %v118_v18, %s1704_s0 }
  0xf3   :  { %138 = vrot.lane.b32.xlu1 %v123_v19, %s1701_s3  ;;  %136 = vrot.lane.b32.xlu0 %v123_v19, %s1704_s0 }
  0xf7   :  { %158 = vrot.lane.b32.xlu0 %v118_v18, %s1705_s4 }
 0x15d   :  { %v132_v20 = vpop.permute.xlu1 %131  ;;  %v128_v21 = vpop.permute.xlu0 %127 }
 0x15e   :  { %235 = vrot.lane.b32.xlu1 %v128_v21, %s1705_s4 }
 0x161   :  { %v130_v22 = vpop.permute.xlu0 %129  ;;  %v135_v23 = vpop.permute.xlu1 %134 }
 0x162   :  { %387 = vrot.lane.b32.xlu1 %v132_v20, %s1705_s4  ;;  %311 = vrot.lane.b32.xlu0 %v130_v22, %s1705_s4 }
 0x165   :  { %v137_v24 = vpop.permute.xlu0 %136  ;;  %v139_v25 = vpop.permute.xlu1 %138 }
 0x166   :  { %539 = vrot.lane.b32.xlu1 %v135_v23, %s1705_s4  ;;  %463 = vrot.lane.b32.xlu0 %v123_v19, %s1705_s4 }
 0x169   :  { %v159_v26 = vpop.permute.xlu0 %158 }
 0x16a   :  { %691 = vrot.lane.b32.xlu1 %v139_v25, %s1705_s4  ;;  %615 = vrot.lane.b32.xlu0 %v137_v24, %s1705_s4 }
 0x16b   :  { %1499 = vmatpush3.xpose.msk.msra.mxu1 %vm160_vm2, %v159_v26 }
 0x16c   :  { %1503 = vmatprep.subr.mxu1 %v1700_v16 }
 0x16e   :  { %1501 = vmatmul.mubr.msk.f32.vlgmr.msra.gmra.mrb[0].mxu1 %vm160_vm2, %v118_v18 }
 0x16f   :  { %1505 = vmatprep.mubr.msk.f32.mxu1 %vm1703_vm1, %v1700_v16 }
 0x1d0   :  { %v236_v27 = vpop.permute.xlu1 %235 }
 0x1d1   :  { %1504 = vmatpush3.xpose.msk.msra.mxu1 %vm160_vm2, %v236_v27 }
 0x1d2   :  { %1508 = vmatprep.subr.mxu1 %v1700_v16 }
 0x1d4   :  { %v388_v28 = vpop.permute.xlu1 %387  ;;  %1506 = vmatmul.mubr.msk.f32.vlgmr.msra.gmra.mrb[2].mxu1 %vm160_vm2, %v128_v21  ;;  %v312_v29 = vpop.permute.xlu0 %311 }
 0x1d5   :  { %1509 = vmatpush3.xpose.msk.msra.mxu1 %vm160_vm2, %v312_v29  ;;  %1510 = vmatprep.mubr.msk.f32.mxu1 %vm1703_vm1, %v1700_v16 }
 0x1d6   :  { %1513 = vmatprep.subr.mxu1 %v1700_v16 }
 0x1d8   :  { %1511 = vmatmul.mubr.msk.f32.vlgmr.msra.gmra.mrb[4].mxu1 %vm160_vm2, %v130_v22  ;;  %v464_v30 = vpop.permute.xlu0 %463  ;;  %v540_v31 = vpop.permute.xlu1 %539 }
 0x1d9   :  { %1514 = vmatpush3.xpose.msk.msra.mxu1 %vm160_vm2, %v388_v28  ;;  %1519 = vmatpush3.xpose.msk.msra.mxu0 %vm160_vm2, %v464_v30 }
 0x1da   :  { %1515 = vmatprep.mubr.msk.f32.mxu1 %vm1703_vm1, %v1700_v16  ;;  %1523 = vmatprep.subr.mxu1 %v1700_v16 }
 0x1db   :  { %1528 = vmatprep.subr.mxu0 %v1700_v16 }
 0x1dc   :  { %1516 = vmatmul.mubr.msk.f32.vlgmr.msra.gmra.mrb[6].mxu1 %vm160_vm2, %v132_v20  ;;  %1521 = vmatmul.mubr.msk.f32.vlgmr.msra.gmra.mrb[2].mxu0 %vm160_vm2, %v123_v19  ;;  %v616_v32 = vpop.permute.xlu0 %615  ;;  %v692_v33 = vpop.permute.xlu1 %691 }
 0x1dd   :  { %1524 = vmatpush3.xpose.msk.msra.mxu1 %vm160_vm2, %v540_v31  ;;  %1529 = vmatpush3.xpose.msk.msra.mxu0 %vm160_vm2, %v616_v32 }
 0x1de   :  { %1525 = vmatprep.mubr.msk.f32.mxu1 %vm1703_vm1, %v1700_v16  ;;  %1530 = vmatprep.mubr.msk.f32.mxu0 %vm1703_vm1, %v1700_v16 }
 0x1df   :  { %1533 = vmatprep.subr.mxu1 %v1700_v16  ;;  %1538 = vmatprep.subr.mxu0 %v1700_v16 }
 0x1e0   :  { %1526 = vmatmul.mubr.msk.f32.vlgmr.msra.gmra.mrb[8].mxu1 %vm160_vm2, %v135_v23  ;;  %1531 = vmatmul.mubr.msk.f32.vlgmr.msra.gmra.mrb[4].mxu0 %vm160_vm2, %v137_v24 }
 0x1e1   :  { %1534 = vmatpush3.xpose.msk.msra.mxu1 %vm160_vm2, %v692_v33  ;;  %1535 = vmatprep.mubr.msk.f32.mxu1 %vm1703_vm1, %v1700_v16 }
 0x1e2   :  { %1539 = vmatpush3.msra.mxu0 %v1771_v8  ;;  %1540 = vmatprep.mubr.msk.f32.mxu0 %vm1703_vm1, %v1700_v16 }
 0x1e3   :  { %1543 = vmatprep.subr.mxu1 %v1700_v16 }
 0x1e4   :  { %1536 = vmatmul.mubr.msk.f32.vlgmr.msra.gmra.mrb[10].mxu1 %vm160_vm2, %v139_v25 }
 0x1e5   :  { %1544 = vmatpush3.msra.mxu1 %v1784_v13  ;;  %1545 = vmatprep.mubr.msk.f32.mxu1 %vm1703_vm1, %v1700_v16 }
 0x1e6   :  { %1567 = vmatprep.subr.mxu1 %v1700_v16 }
 0x241   :  { %v231_v34 = vpop.f32.mrb[0].mxu1 }
 0x242   :  { %v1502_v35 = vpop.f32.mrb[1].mxu1  ;;  %v232_v59 = vadd.f32 %v231_v34, %v151_v42 }
 0x244   :  { %v768_v3 = vsel %vm767_vm5, %v232_v59, -inf }
 0x2a7   :  { %v307_v43 = vpop.f32.mrb[2].mxu1 }
 0x2a8   :  { %v308_v44 = vadd.f32 %v307_v43, %v151_v42  ;;  %v1507_v45 = vpop.f32.mrb[3].mxu1 }
 0x2aa   :  { %v771_v47 = vsel %vm767_vm5, %v308_v44, -inf }
 0x2ab   :  { %772 = vmax.xlane.f32.xlu1 %v771_v47  ;;  %v383_v48 = vpop.f32.mrb[4].mxu1 }
 0x2ac   :  { %v384_v49 = vadd.f32 %v383_v48, %v151_v42  ;;  %v1512_v50 = vpop.f32.mrb[5].mxu1 }
 0x2ae   :  { %v774_v52 = vsel %vm767_vm5, %v384_v49, -inf }
 0x2af   :  { %775 = vmax.xlane.f32.xlu1 %v774_v52  ;;  %v459_v53 = vpop.f32.mrb[6].mxu1  ;;  %v535_v54 = vpop.f32.mrb[2].mxu0 }
 0x2b0   :  { %v460_v55 = vadd.f32 %v459_v53, %v151_v42  ;;  %v536_v56 = vadd.f32 %v535_v54, %v155_v51  ;;  %v1517_v57 = vpop.f32.mrb[7].mxu1  ;;  %v1522_v58 = vpop.f32.mrb[3].mxu0 }
 0x2b2   :  { %v777_v60 = vsel %vm767_vm5, %v460_v55, -inf  ;;  %v780_v61 = vsel %vm767_vm5, %v536_v56, -inf }
 0x2b3   :  { %778 = vmax.xlane.f32.xlu1 %v777_v60  ;;  %v611_v62 = vpop.f32.mrb[8].mxu1  ;;  %781 = vmax.xlane.f32.xlu0 %v780_v61  ;;  %v687_v63 = vpop.f32.mrb[4].mxu0 }
 0x2b4   :  { %v1527_v0 = vpop.f32.mrb[9].mxu1  ;;  %v1532_v1 = vpop.f32.mrb[5].mxu0  ;;  %v688_v2 = vadd.f32 %v687_v63, %v155_v51  ;;  %v612_v6 = vadd.f32 %v611_v62, %v155_v51 }
 0x2b6   :  { %v786_v7 = vsel %vm767_vm5, %v688_v2, -inf  ;;  %v783_v9 = vsel %vm767_vm5, %v612_v6, -inf }
 0x2b7   :  { %v763_v4 = vpop.f32.mrb[10].mxu1  ;;  %769 = vmax.xlane.f32.xlu0 %v768_v3 }
 0x2b8   :  { %v1537_v5 = vpop.f32.mrb[11].mxu1  ;;  %v764_v8 = vadd.f32 %v763_v4, %v155_v51 }
 0x2ba   :  { %v789_v10 = vsel %vm767_vm5, %v764_v8, -inf }
 0x2bb   :  { %787 = vmax.xlane.f32.xlu0 %v786_v7 }
 0x2bf   :  { %784 = vmax.xlane.f32.xlu0 %v783_v9 }
 0x2c3   :  { %790 = vmax.xlane.f32.xlu0 %v789_v10 }
 0x338   :  { %v773_v12 = vpop.xlane.xlu1 %772 }
 0x339   :  { %v793_v22 = vsub.f32 %v308_v44, %v773_v12  ;;  %v867_v12 = vand.u32 127, %v148_v36 }
 0x33b   :  { %v802_v28 = vmul.f32 1.442695, %v793_v22  ;;  %vm868_vm6 = vcmp.eq.s32.totalorder %v1844_v38, %v867_v12 }
 0x33c   :  { %v776_v13 = vpop.xlane.xlu1 %775 }
 0x33d   :  { %v794_v18 = vsub.f32 %v384_v49, %v776_v13 }
 0x33f   :  { %v804_v24 = vmul.f32 1.442695, %v794_v18 }
 0x340   :  { %v782_v14 = vpop.xlane.xlu0 %781  ;;  %v779_v20 = vpop.xlane.xlu1 %778 }
 0x341   :  { %v796_v15 = vsub.f32 %v536_v56, %v782_v14  ;;  %v795_v25 = vsub.f32 %v460_v55, %v779_v20  ;;  %v871_v55 = vld [vmem:[%s1953_s2] sm:$0xff]  ;;  %v872_v56 = vld [vmem:[%s1953_s2 + $0x8] sm:$0xff] }
 0x343   :  { %v808_v17 = vmul.f32 1.442695, %v796_v15  ;;  %v806_v30 = vmul.f32 1.442695, %v795_v25 }
 0x344   :  { %v770_v19 = vpop.xlane.xlu0 %769 }
 0x345   :  { %v792_v21 = vsub.f32 %v232_v59, %v770_v19  ;;  %1640 = vpow2.f32 %v808_v17 }
 0x347   :  { %v800_v23 = vmul.f32 1.442695, %v792_v21 }
 0x348   :  { %v788_v26 = vpop.xlane.xlu0 %787 }
 0x349   :  { %1642 = vpow2.f32 %v800_v23  ;;  %v798_v27 = vsub.f32 %v688_v2, %v788_v26 }
 0x34a   :  { %1644 = vpow2.f32 %v804_v24 }
 0x34b   :  { %v812_v29 = vmul.f32 1.442695, %v798_v27 }
 0x34c   :  { %v785_v31 = vpop.xlane.xlu0 %784 }
 0x34d   :  { %1646 = vpow2.f32 %v812_v29  ;;  %v797_v32 = vsub.f32 %v612_v6, %v785_v31 }
 0x34e   :  { %1648 = vpow2.f32 %v802_v28 }
 0x34f   :  { %v810_v33 = vmul.f32 1.442695, %v797_v32  ;;  %v1860_v34 = vpop.eup %1640  ;;  %1650 = vpow2.f32 %v806_v30 }
 0x350   :  { %v791_v35 = vpop.xlane.xlu0 %790  ;;  %v828_v39 = vsel %vm767_vm5, %v1860_v34, 0.0 }
 0x351   :  { %v799_v37 = vsub.f32 %v764_v8, %v791_v35  ;;  %829 = vadd.xlane.f32.xlu1 %v828_v39  ;;  %1652 = vpow2.f32 %v810_v33  ;;  %v895_v33 = vld [vmem:[%s1956_s5] sm:$0xff]  ;;  %v897_v35 = vld [vmem:[%s1956_s5 + $0x10] sm:$0xff]  ;;  %v898_v39 = vld [vmem:[%s1956_s5 + $0x18] sm:$0xff] }
 0x353   :  { %v1643_v40 = vpop.eup %1642  ;;  %v814_v41 = vmul.f32 1.442695, %v799_v37 }
 0x354   :  { %v816_v42 = vsel %vm767_vm5, %v1643_v40, 0.0  ;;  %v1645_v43 = vpop.eup %1644 }
 0x355   :  { %817 = vadd.xlane.f32.xlu1 %v816_v42  ;;  %1654 = vpow2.f32 %v814_v41  ;;  %v822_v47 = vsel %vm767_vm5, %v1645_v43, 0.0  ;;  %v899_v41 = vld [vmem:[%s1956_s5 + $0x20] sm:$0xff]  ;;  %v900_v42 = vld [vmem:[%s1956_s5 + $0x28] sm:$0xff] }
 0x357   :  { %v1647_v44 = vpop.eup %1646 }
 0x358   :  { %v834_v45 = vsel %vm767_vm5, %v1647_v44, 0.0  ;;  %v1649_v46 = vpop.eup %1648 }
 0x359   :  { %835 = vadd.xlane.f32.xlu0 %v834_v45  ;;  %v1651_v48 = vpop.eup %1650  ;;  %823 = vadd.xlane.f32.xlu1 %v822_v47  ;;  %v819_v49 = vsel %vm767_vm5, %v1649_v46, 0.0  ;;  %v902_v45 = vld [vmem:[%s1956_s5 + $0x38] sm:$0xff] }
 0x35a   :  { %v825_v51 = vsel %vm767_vm5, %v1651_v48, 0.0 }
 0x35b   :  { %v1653_v50 = vpop.eup %1652 }
 0x35c   :  { %v831_v52 = vsel %vm767_vm5, %v1653_v50, 0.0 }
 0x35d   :  { %820 = vadd.xlane.f32.xlu0 %v819_v49  ;;  %826 = vadd.xlane.f32.xlu1 %v825_v51 }
 0x35f   :  { %v1655_v53 = vpop.eup %1654 }
 0x360   :  { %v837_v54 = vsel %vm767_vm5, %v1655_v53, 0.0 }
 0x361   :  { %832 = vadd.xlane.f32.xlu0 %v831_v52 }
 0x365   :  { %838 = vadd.xlane.f32.xlu0 %v837_v54 }
 0x36e   :  { %875 = vperm.xlu1 %1638, %v871_v55   ;;  %v1421_v55 = vld [vmem:[%s1957_s6] ss:$0 sm:$0xff] }
 0x37b   :  { %880 = vperm.xlu0 %1639, %v872_v56  }
 0x3de   :  { %v830_v57 = vpop.xlane.xlu1 %829 }
 0x3e2   :  { %v818_v58 = vpop.xlane.xlu1 %817 }
 0x3e3   :  { %1656 = vrcp.f32 %v818_v58 }
 0x3e6   :  { %v836_v59 = vpop.xlane.xlu0 %835  ;;  %v824_v60 = vpop.xlane.xlu1 %823 }
 0x3e7   :  { %1658 = vrcp.f32 %v824_v60 }
 0x3ea   :  { %v821_v61 = vpop.xlane.xlu0 %820  ;;  %v827_v62 = vpop.xlane.xlu1 %826 }
 0x3eb   :  { %1660 = vrcp.f32 %v821_v61 }
 0x3ec   :  { %1662 = vrcp.f32 %v830_v57 }
 0x3ed   :  { %1664 = vrcp.f32 %v827_v62  ;;  %v1657_v1 = vpop.eup %1656 }
 0x3ee   :  { %1666 = vrcp.f32 %v836_v59  ;;  %v833_v63 = vpop.xlane.xlu0 %832  ;;  %v848_v5 = vmul.f32 %v1657_v1, %v1643_v40  ;;  %v876_v22 = vpop.permute.xlu1 %875  ;;  %v1608_v40 = vpack.c.bf16 %v898_v39, %v897_v35  ;;  %v1144_v1 = vld [vmem:[%s1956_s5 + $0x48] sm:$0xff] }
 0x3ef   :  { %1668 = vrcp.f32 %v833_v63 }
 0x3f1   :  { %v1659_v2 = vpop.eup %1658 }
 0x3f2   :  { %v839_v0 = vpop.xlane.xlu0 %838  ;;  %v850_v9 = vmul.f32 %v1659_v2, %v1645_v43  ;;  %v1612_v43 = vpack.c.bf16 %v900_v42, %v899_v41 }
 0x3f3   :  { %1670 = vrcp.f32 %v839_v0  ;;  %v1143_v0 = vld [vmem:[%s1956_s5 + $0x40] sm:$0xff] }
 0x3f5   :  { %v1661_v3 = vpop.eup %1660 }
 0x3f6   :  { %v1663_v4 = vpop.eup %1662  ;;  %v849_v6 = vmul.f32 %v1661_v3, %v1649_v46 }
 0x3f7   :  { %v1665_v7 = vpop.eup %1664  ;;  %v852_v15 = vmul.f32 %v1663_v4, %v1860_v34  ;;  %v896_v34 = vld [vmem:[%s1956_s5 + $0x8] sm:$0xff] }
 0x3f8   :  { %v1667_v8 = vpop.eup %1666  ;;  %v856_v10 = vadd.f32 %v849_v6, %v848_v5  ;;  %v851_v13 = vmul.f32 %v1665_v7, %v1651_v48  ;;  %v1604_v37 = vpack.c.bf16 %v896_v34, %v895_v33  ;;  %v1620_v5 = vpack.c.bf16 %v1144_v1, %v1143_v0  ;;  %v1145_v7 = vld [vmem:[%s1956_s5 + $0x50] sm:$0xff] }
 0x3f9   :  { %v1669_v11 = vpop.eup %1668  ;;  %v854_v19 = vmul.f32 %v1667_v8, %v1647_v44  ;;  %v901_v44 = vld [vmem:[%s1956_s5 + $0x30] sm:$0xff]  ;;  %v1146_v8 = vld [vmem:[%s1956_s5 + $0x58] sm:$0xff]  ;;  %s1707_s5 = smov [#allocation2]  }
 0x3fa   :  { %v858_v14 = vadd.f32 %v856_v10, %v850_v9  ;;  %v853_v17 = vmul.f32 %v1669_v11, %v1653_v50  ;;  %v881_v36 = vpop.permute.xlu0 %880  ;;  %1605 = vmatprep.subr.bf16.mxu0 %v1604_v37  ;;  %v1616_v46 = vpack.c.bf16 %v902_v45, %v901_v44  ;;  %v1624_v9 = vpack.c.bf16 %v1146_v8, %v1145_v7  ;;  %s1389_s2 = sshll.u32 %s1707_s5, 4  ;;  %s1390_s2 = int_to_ptr.vmem [resolvable:$true] %s1389_s2 }
 0x3fb   :  { %p1681_p1 = scmp.lt.s32.totalorder %s1390_s2, %s1390_s2 }
 0x3fc   :  { %v860_v18 = vadd.f32 %v858_v14, %v851_v13  ;;  %v857_v20 = vadd.f32 %v853_v17, %v852_v15  ;;  %v1426_v13 = vld [vmem:[%s1957_s6 + $0x1] ss:$0 sm:$0xff]  ;;  %s1676_s6 = scalar_lea.vmem %s1390_s2, 256 }
 0x3fd   :  { %v1671_v21 = vpop.eup %1670  ;;  %p1677_p0 = scmp.ne.s32.totalorder %s1390_s2, %s1676_s6  ;;  %p1682_p2 = scmp.lt.s32.totalorder %s1676_s6, %s1676_s6 }
 0x3fe   :  { %v862_v23 = vmul.f32 0.25, %v860_v18  ;;  %v855_v24 = vmul.f32 %v1671_v21, %v1655_v53  ;;  %v859_v25 = vadd.f32 %v857_v20, %v854_v19 }
 0x3ff   :  { %p1683_p3 = por %p1682_p2, %p1681_p1 }
 0x400   :  { %v869_v26 = vsel %vm868_vm6, 1.0, %v862_v23  ;;  %v861_v27 = vadd.f32 %v859_v25, %v855_v24 }
 0x401   :  { %v883_v28 = vmul.f32 %v876_v22, %v869_v26  ;;  %p1684_p4 = pnand %p1683_p3, %p1677_p0 }
 0x402   :  { %v863_v29 = vmul.f32 0.25, %v861_v27 }
 0x403   :  { %1541 = vmatmul.mubr.msk.f32.vlgmr.msra.gmra.mrb[6].mxu0 %vm767_vm5, %v883_v28  ;;  %v885_v30 = vsel %vm767_vm5, %v883_v28, 0.0 }
 0x404   :  { %886 = vadd.xlane.f32.xlu1 %v885_v30  ;;  %v870_v31 = vsel %vm868_vm6, 1.0, %v863_v29  ;;  %1607 = vmatpush3.bf16.msra.mxu0 %v1604_v37 }
 0x405   :  { %v884_v32 = vmul.f32 %v881_v36, %v870_v31  ;;  %1609 = vmatprep.subr.bf16.mxu0 %v1608_v40 }
 0x407   :  { %1546 = vmatmul.mubr.msk.f32.vlgmr.msra.gmra.mrb[12].mxu1 %vm767_vm5, %v884_v32  ;;  %v888_v38 = vsel %vm767_vm5, %v884_v32, 0.0 }
 0x408   :  { %889 = vadd.xlane.f32.xlu0 %v888_v38  ;;  %1569 = vmatprep.mubr.msk.f32.mxu1 %vm1703_vm1, %v1700_v16 }
 0x409   :  { %1611 = vmatpush3.bf16.msra.mxu0 %v1608_v40 }
 0x40a   :  { %1613 = vmatprep.subr.bf16.mxu0 %v1612_v43 }
 0x40d   :  { %1615 = vmatpush3.bf16.msra.mxu0 %v1612_v43 }
 0x40e   :  { %1617 = vmatprep.subr.bf16.mxu0 %v1616_v46 }
 0x411   :  { %1619 = vmatpush3.bf16.msra.mxu0 %v1616_v46 }
 0x491   :  { %v887_v52 = vpop.xlane.xlu1 %886 }
 0x492   :  { %v891_v54 = vadd.f32 1.0, %v887_v52 }
 0x495   :  { %v890_v51 = vpop.xlane.xlu0 %889 }
 0x496   :  { %v892_v53 = vadd.f32 1.0, %v890_v51 }
 0x498   :  { %1672 = vrcp.f32 %v892_v53 }
 0x499   :  { %1674 = vrcp.f32 %v891_v54 }
 0x4a2   :  { %v1673_v59 = vpop.eup %1672 }
 0x4a3   :  { %v1675_v61 = vpop.eup %1674 }
 0x4d6   :  { %v973_v47 = vpop.f32.mrb[6].mxu0 }
 0x4d7   :  { %v1542_v48 = vpop.f32.mrb[7].mxu0  ;;  %1564 = vmatprep.mubr.msk.f32.mxu0 %vm44_vm0, %v973_v47 }
 0x4da   :  { %v1046_v49 = vpop.f32.mrb[12].mxu1 }
 0x4db   :  { %v1547_v50 = vpop.f32.mrb[13].mxu1  ;;  %1565 = vmatmul.mubr.msk.f32.vlgmr.msra.gmra.mrb[8].mxu0 %vm44_vm0, %v1046_v49 }
 0x5ae   :  { %v1566_v56 = vpop.f32.mrb[8].mxu0 }
 0x5af   :  { %v1132_v57 = vadd.f32 %v1566_v56, %v1421_v55  ;;  %v1126_v58 = vpop.f32.mrb[9].mxu0 }
 0x5b0   :  { %v1127_v60 = vadd.f32 %v1421_v55, %v1126_v58 }
 0x5b1   :  { %v1136_v62 = vmul.f32 %v1673_v59, %v1132_v57 }
 0x5b2   :  { %v1135_v63 = vmul.f32 %v1675_v61, %v1127_v60 }
 0x5b3   :  { %v1140_v2 = vmul.f32 0.2, %v1136_v62  ;;  %vm1138_vm8 = vcmp.gt.f32.partialorder %v1136_v62, 0.0 }
 0x5b4   :  { %v1139_v3 = vmul.f32 0.2, %v1135_v63  ;;  %vm1137_vm7 = vcmp.gt.f32.partialorder %v1135_v63, 0.0 }
 0x5b5   :  { %v1142_v6 = vsel %vm1138_vm8, %v1136_v62, %v1140_v2 }
 0x5b6   :  { %v1141_v4 = vsel %vm1137_vm7, %v1135_v63, %v1139_v3 }
 0x5b7   :  { %1568 = vmatpush3.msra.mxu1 %v1141_v4 }
 0x5b8   :  { %1570 = vmatmul.mubr.msk.f32.vlgmr.msra.gmra.mrb[14].mxu1 %vm767_vm5, %v883_v28  ;;  %1572 = vmatprep.subr.mxu1 %v1700_v16 }
 0x5b9   :  { %1573 = vmatpush3.msra.mxu1 %v1142_v6  ;;  %1574 = vmatprep.mubr.msk.f32.mxu1 %vm1703_vm1, %v1700_v16 }
 0x5ba   :  { %1621 = vmatprep.subr.bf16.mxu1 %v1620_v5 }
 0x5bc   :  { %1575 = vmatmul.mubr.msk.f32.vlgmr.msra.gmra.mrb[16].mxu1 %vm767_vm5, %v884_v32 }
 0x5bd   :  { %1623 = vmatpush3.bf16.msra.mxu1 %v1620_v5 }
 0x5be   :  { %1625 = vmatprep.subr.bf16.mxu1 %v1624_v9 }
 0x5c1   :  { %1627 = vmatpush3.bf16.msra.mxu1 %v1624_v9 }
 0x68b   :  { %v1214_v10 = vpop.f32.mrb[14].mxu1 }
 0x68c   :  { %v1571_v11 = vpop.f32.mrb[15].mxu1  ;;  %1585 = vmatprep.mubr.msk.f32.mxu1 %vm1292_vm9, %v1214_v10 }
 0x68f   :  { %v1284_v16 = vpop.f32.mrb[16].mxu1 }
 0x690   :  { %v1576_v12 = vpop.f32.mrb[17].mxu1  ;;  %1586 = vmatmul.mubr.msk.f32.vlgmr.msra.gmra.mrb[18].mxu1 %vm1292_vm9, %v1284_v16 }
 0x763   :  { %v1587_v14 = vpop.f32.mrb[18].mxu1 }
 0x764   :  { %v1371_v15 = vadd.f32 %v1587_v14, %v1426_v13  ;;  %v1365_v17 = vpop.f32.mrb[19].mxu1 }
 0x765   :  { %v1366_v18 = vadd.f32 %v1426_v13, %v1365_v17 }
 0x766   :  { %v1375_v19 = vmul.f32 %v1673_v59, %v1371_v15 }
 0x767   :  { %v1374_v20 = vmul.f32 %v1675_v61, %v1366_v18 }
 0x768   :  { %vm1377_vm10 = vcmp.gt.f32.partialorder %v1375_v19, 0.0  ;;  %v1379_v21 = vmul.f32 0.2, %v1375_v19 }
 0x769   :  { %vm1376_vm11 = vcmp.gt.f32.partialorder %v1374_v20, 0.0  ;;  %v1378_v22 = vmul.f32 0.2, %v1374_v20 }
 0x76a   :  { %v1381_v23 = vsel %vm1377_vm10, %v1375_v19, %v1379_v21 }
 0x76b   :  { %1383 = vst.msk [vmem:[#allocation2 + $0x8] sm:$0xff] %vm1292_vm9, %v1381_v23  ;;  %v1380_v24 = vsel %vm1376_vm11, %v1374_v20, %v1378_v22 }
 0x76c   :  { %1382 = vst.msk [vmem:[#allocation2] sm:$0xff] %vm1292_vm9, %v1380_v24 }
 0x76d   :  { %1687 = shalt.err (!%p1684_p4)
}
 0x76e   :  { %s1688_s10 = scalar_lea.hbm %s1958_s7, 256 }
 0x76f   :  { %p1689_p5 = scmp.ne.s32.totalorder %s1958_s7, %s1688_s10  ;;  %p1692_p6 = scmp.lt.u32.totalorder %s1688_s10, %s1958_s7 }
 0x771   :  { %p1694_p7 = pnand %p1692_p6, %p1689_p5 }
 0x773   :  { %1697 = shalt.err (!%p1694_p7)
}
 0x774   :  { %s1708_s15 = smov 128   ;;  %s1709_s16 = smov 8  }
 0x775   :  { %1395 = dma.vmem_to_hbm [thread:$0]  %s1390_s2, 256, %s1958_s7, [#allocation3], %s1708_s15, %s1708_s15, %s1709_s16  }
 0x776   :  { %1698 = dma.done.wait [#allocation3], 256  }
 0x777   :  { %1699 = vsyncadd [#allocation3], 4294967040 }
 0x778   :  { %1399 = vsyncpa [#allocation3], 1 }

</bundles_post_ra>
